<compile_context>
chip_gen: v7x
topology: tpu7x:2x2x1
jax: 0.10.0
libtpu: 0.0.40
codegen_flags: <defaults>
</compile_context>

<pallas_src>
import functools

import numpy as np
import jax
import jax.numpy as jnp
from jax.experimental import pallas as pl
from jax.experimental.pallas import tpu as pltpu

F32 = jnp.float32
BF16 = jnp.bfloat16

TM_MAX, TK_MAX, TN_MAX = 256, 1024, 256


def _round_up(x, m):
    return ((x + m - 1) // m) * m


def _pick_tile(total, max_tile, quantum):
    """Largest divisor of `total` that is a multiple of `quantum` and <= max_tile."""
    best = quantum
    t = quantum
    top = min(max_tile, total)
    while t <= top:
        if total % t == 0:
            best = t
        t += quantum
    return best


# -----------------------------------------------------------------------------
# Pallas kernel 1: (batched / grouped) tiled matmul with fused epilogue
#   out[g] = act( A[g] @ B[g] + bias[g] (+ res[g]) )
# -----------------------------------------------------------------------------
@functools.lru_cache(maxsize=None)
def _mm_call(G, Mp, Kp, Np, tm, tk, tn, relu, has_res, out_dtype_name):
    out_dtype = jnp.dtype(out_dtype_name)
    grid = (G, Mp // tm, Np // tn, Kp // tk)

    def kernel(*refs):
        if has_res:
            a_ref, b_ref, bias_ref, res_ref, o_ref, acc_ref = refs
        else:
            a_ref, b_ref, bias_ref, o_ref, acc_ref = refs
            res_ref = None
        kk = pl.program_id(3)

        @pl.when(kk == 0)
        def _zero():
            acc_ref[...] = jnp.zeros_like(acc_ref)

        acc_ref[...] += jnp.einsum(
            'gmk,gkn->gmn', a_ref[...], b_ref[...],
            preferred_element_type=jnp.float32)

        @pl.when(kk == pl.num_programs(3) - 1)
        def _store():
            r = acc_ref[...] + bias_ref[...]
            if has_res:
                r = r + res_ref[...].astype(jnp.float32)
            if relu:
                r = jnp.maximum(r, 0.0)
            o_ref[...] = r.astype(out_dtype)

    in_specs = [
        pl.BlockSpec((1, tm, tk), lambda g, i, j, k: (g, i, k)),
        pl.BlockSpec((1, tk, tn), lambda g, i, j, k: (g, k, j)),
        pl.BlockSpec((1, 1, tn), lambda g, i, j, k: (g, 0, j)),
    ]
    if has_res:
        in_specs.append(pl.BlockSpec((1, tm, tn), lambda g, i, j, k: (g, i, j)))

    f = pl.pallas_call(
        kernel,
        out_shape=jax.ShapeDtypeStruct((G, Mp, Np), out_dtype),
        grid_spec=pltpu.PrefetchScalarGridSpec(
            num_scalar_prefetch=0,
            grid=grid,
            in_specs=in_specs,
            out_specs=pl.BlockSpec((1, tm, tn), lambda g, i, j, k: (g, i, j)),
            scratch_shapes=[pltpu.VMEM((1, tm, tn), jnp.float32)],
        ),
        compiler_params=pltpu.CompilerParams(
            dimension_semantics=("parallel", "parallel", "parallel", "arbitrary")),
    )
    return jax.jit(f)


def batched_matmul(a, b, bias=None, res=None, relu=False, out_dtype=BF16):
    """a: (G, M, K); b: (G, Kp, Np) pre-padded (Kp/Np multiples of 128);
    bias: (G, 1, Np) f32 or None; res: (G, M, Np) or None.  Returns (G, M, Np)."""
    G, M, K = a.shape
    Gb, Kp, Np = b.shape
    assert G == Gb and Kp % 128 == 0 and Np % 128 == 0 and K <= Kp
    Mp = _round_up(M, 8)
    tm = _pick_tile(Mp, TM_MAX, 8)
    tk = _pick_tile(Kp, TK_MAX, 128)
    tn = _pick_tile(Np, TN_MAX, 128)
    if (Mp != M) or (Kp != K):
        a = jnp.pad(a, ((0, 0), (0, Mp - M), (0, Kp - K)))
    if bias is None:
        bias = jnp.zeros((G, 1, Np), F32)
    args = [a, b, bias]
    if res is not None:
        rM, rN = res.shape[1], res.shape[2]
        if (rM != Mp) or (rN != Np):
            res = jnp.pad(res, ((0, 0), (0, Mp - rM), (0, Np - rN)))
        args.append(res)
    out = _mm_call(G, Mp, Kp, Np, tm, tk, tn, bool(relu), res is not None,
                   jnp.dtype(out_dtype).name)(*args)
    return out[:, :M, :]


def pallas_matmul2d(a, b, out_dtype=F32):
    """Plain A(M,K) @ B(K,N) via the batched kernel (G=1)."""
    M, K = a.shape
    K2, N = b.shape
    assert K == K2
    Kp, Np = _round_up(K, 128), _round_up(N, 128)
    if (Kp != K) or (Np != N):
        b = jnp.pad(b, ((0, Kp - K), (0, Np - N)))
    out = batched_matmul(a[None], b[None], out_dtype=out_dtype)
    return out[0, :, :N]


# -----------------------------------------------------------------------------
# Pallas kernel 2: depthwise 3x3 conv ('same', stride 1, padding = dilation)
# -----------------------------------------------------------------------------
@functools.lru_cache(maxsize=None)
def _dw_call(n, h, w, cp, cblk, hp, wp, offsets, out_dtype_name):
    out_dtype = jnp.dtype(out_dtype_name)
    nt = len(offsets)

    def kernel(x_ref, w_ref, o_ref):
        wv = w_ref[...].astype(jnp.float32)                 # (nt, cblk)
        acc = jnp.zeros((1, h, w, cblk), jnp.float32)
        for t, (oy, ox) in enumerate(offsets):
            xs = x_ref[:, oy:oy + h, ox:ox + w, :].astype(jnp.float32)
            acc = acc + xs * wv[t]
        o_ref[...] = acc.astype(out_dtype)

    f = pl.pallas_call(
        kernel,
        out_shape=jax.ShapeDtypeStruct((n, h, w, cp), out_dtype),
        grid_spec=pltpu.PrefetchScalarGridSpec(
            num_scalar_prefetch=0,
            grid=(n, cp // cblk),
            in_specs=[
                pl.BlockSpec((1, hp, wp, cblk), lambda b, c: (b, 0, 0, c)),
                pl.BlockSpec((nt, cblk), lambda b, c: (0, c)),
            ],
            out_specs=pl.BlockSpec((1, h, w, cblk), lambda b, c: (b, 0, 0, c)),
        ),
        compiler_params=pltpu.CompilerParams(
            dimension_semantics=("parallel", "parallel")),
    )
    return jax.jit(f)


def depthwise_conv3x3(x, w9, dilation):
    """x: (N,H,W,C) bf16, w9: (9,C) f32.  Returns (N,H,W,Cp) bf16 where
    Cp = round_up(C,128); padded channels stay zero (consumed as zero-weight
    rows by the following pointwise matmul)."""
    n, h, w, c = x.shape
    cp = _round_up(c, 128)
    if cp != c:
        x = jnp.pad(x, ((0, 0), (0, 0), (0, 0), (0, cp - c)))
        w9 = jnp.pad(w9, ((0, 0), (0, cp - c)))
    d = dilation
    if d >= h and d >= w:
        # every off-centre tap samples only zero padding -> exact centre-tap path
        offsets = ((0, 0),)
        wsel = w9[4:5]
        xp, hp, wp = x, h, w
    else:
        offsets = tuple((ti * d, tj * d) for ti in range(3) for tj in range(3))
        wsel = w9
        xp = jnp.pad(x, ((0, 0), (d, d), (d, d), (0, 0)))
        hp, wp = h + 2 * d, w + 2 * d
    cblk = _pick_tile(cp, 512, 128)
    return _dw_call(n, h, w, cp, cblk, hp, wp, offsets, jnp.dtype(BF16).name)(
        xp.astype(BF16), wsel.astype(F32))


# -----------------------------------------------------------------------------
# Parameter preparation (done once): fold BN, transpose, pad, cast to bf16
# -----------------------------------------------------------------------------
def _fold_bn(w, bn, bias):
    w = w.astype(F32)
    if bn is not None:
        scale = bn['gamma'] / jnp.sqrt(bn['var'] + 1e-5)
        shift = bn['beta'] - bn['mean'] * scale
        w = w * scale[:, None, None, None]
        bias = shift if bias is None else bias * scale + shift
    if bias is None:
        bias = jnp.zeros((w.shape[0],), F32)
    return w, bias


def prep_conv(w, bn=None, bias=None, relu=False):
    """Dense conv (any kh,kw). w: (cout, cin, kh, kw)."""
    w, bias = _fold_bn(w, bn, bias)
    cout, cin, kh, kw = w.shape
    K, N = kh * kw * cin, cout
    Kp, Np = _round_up(K, 128), _round_up(N, 128)
    B = jnp.transpose(w, (2, 3, 1, 0)).reshape(K, N)
    B = jnp.pad(B, ((0, Kp - K), (0, Np - N))).astype(BF16)[None]        # (1,Kp,Np)
    b = jnp.pad(bias, (0, Np - N)).reshape(1, 1, Np).astype(F32)
    return dict(B=B, bias=b, K=K, N=N, kh=kh, kw=kw, relu=relu)


def prep_group_conv(w, bn, groups, relu=True):
    """Grouped 3x3 conv. w: (cout, cin_per_group, 3, 3)."""
    w, bias = _fold_bn(w, bn, None)
    cout, cin_g, kh, kw = w.shape
    cg_out = cout // groups
    K = kh * kw * cin_g
    Kp = _round_up(K, 128)
    Np = _round_up(cg_out, 128)
    wg = w.reshape(groups, cg_out, cin_g, kh, kw).transpose(0, 3, 4, 2, 1)
    wg = wg.reshape(groups, K, cg_out)
    B = jnp.pad(wg, ((0, 0), (0, Kp - K), (0, Np - cg_out))).astype(BF16)
    b = jnp.pad(bias.reshape(groups, cg_out), ((0, 0), (0, Np - cg_out)))
    b = b.reshape(groups, 1, Np).astype(F32)
    return dict(B=B, bias=b, K=K, cg_in=cin_g, cg_out=cg_out, groups=groups, relu=relu)


def prep_depthwise(w):
    """Depthwise 3x3 weights (C,1,3,3) -> (9,C) f32 (no bias / BN on depthwise)."""
    c = w.shape[0]
    return jnp.transpose(w.reshape(c, 9), (1, 0)).astype(F32)


# -----------------------------------------------------------------------------
# Conv wrappers (im2col / layout glue in XLA, matmul in Pallas)
# -----------------------------------------------------------------------------
def conv1x1(x, p, res=None, relu=None, out_dtype=BF16):
    n, h, w, c = x.shape
    M = n * h * w
    a = x.reshape(1, M, c)
    r = res.reshape(1, M, res.shape[-1]) if res is not None else None
    out = batched_matmul(a, p['B'], p['bias'], res=r,
                         relu=p['relu'] if relu is None else relu,
                         out_dtype=out_dtype)
    return out[0, :, :p['N']].reshape(n, h, w, p['N'])


def _im2col(x, kh, kw, stride, dilation, padding):
    n = x.shape[0]
    if padding > 0:
        x = jnp.pad(x, ((0, 0), (padding, padding), (padding, padding), (0, 0)))
    hp, wp = x.shape[1], x.shape[2]
    oh = (hp - dilation * (kh - 1) - 1) // stride + 1
    ow = (wp - dilation * (kw - 1) - 1) // stride + 1
    cols = []
    for i in range(kh):
        for j in range(kw):
            cols.append(x[:, i * dilation:i * dilation + (oh - 1) * stride + 1:stride,
                          j * dilation:j * dilation + (ow - 1) * stride + 1:stride, :])
    a = jnp.concatenate(cols, axis=-1) if len(cols) > 1 else cols[0]
    return a.reshape(n * oh * ow, a.shape[-1]), (n, oh, ow)


def conv2d_dense(x, p, stride=1, dilation=1, padding=0, out_dtype=BF16):
    kh, kw = p['kh'], p['kw']
    if kh == 1 and kw == 1 and stride == 1 and padding == 0:
        return conv1x1(x, p, out_dtype=out_dtype)
    a, (n, oh, ow) = _im2col(x, kh, kw, stride, dilation, padding)
    out = batched_matmul(a[None], p['B'], p['bias'], relu=p['relu'],
                         out_dtype=out_dtype)
    return out[0, :, :p['N']].reshape(n, oh, ow, p['N'])


def conv3x3_grouped(x, p, stride=1, dilation=1):
    """ResNeXt grouped 3x3 conv (padding = dilation) as a group-batched matmul."""
    n, h, w, c = x.shape
    g, cg_in, cg_out = p['groups'], p['cg_in'], p['cg_out']
    assert c == g * cg_in
    d, s, pad = dilation, stride, dilation
    xp = jnp.pad(x, ((0, 0), (pad, pad), (pad, pad), (0, 0)))
    hp, wp = xp.shape[1], xp.shape[2]
    oh = (hp - 2 * d - 1) // s + 1
    ow = (wp - 2 * d - 1) // s + 1
    taps = []
    for i in range(3):
        for j in range(3):
            taps.append(xp[:, i * d:i * d + (oh - 1) * s + 1:s,
                           j * d:j * d + (ow - 1) * s + 1:s, :])
    m = n * oh * ow
    a = jnp.stack(taps, axis=3).reshape(m, 9, g, cg_in)
    a = a.transpose(2, 0, 1, 3).reshape(g, m, 9 * cg_in)
    out = batched_matmul(a, p['B'], p['bias'], relu=p['relu'], out_dtype=BF16)
    out = out[:, :, :cg_out].transpose(1, 0, 2).reshape(n, oh, ow, g * cg_out)
    return out


def maxpool_3x3_s2_p1(x):
    # fused XLA reduce_window (per perf review: beats materializing 9 shifted copies)
    return jax.lax.reduce_window(
        x, jnp.asarray(-jnp.inf, x.dtype), jax.lax.max,
        window_dimensions=(1, 3, 3, 1), window_strides=(1, 2, 2, 1),
        padding=((0, 0), (1, 1), (1, 1), (0, 0)))


def _bilinear_matrix(out_size, in_size, align_corners):
    if in_size == 1:
        return np.ones((out_size, 1), np.float32)
    dst = np.arange(out_size, dtype=np.float64)
    if align_corners:
        src = dst * (in_size - 1) / (out_size - 1) if out_size > 1 else np.zeros_like(dst)
    else:
        src = np.clip((dst + 0.5) * (in_size / out_size) - 0.5, 0.0, in_size - 1)
    i0 = np.clip(np.floor(src).astype(np.int64), 0, in_size - 1)
    i1 = np.minimum(i0 + 1, in_size - 1)
    w1 = src - i0
    w0 = 1.0 - w1
    m = np.zeros((out_size, in_size), np.float64)
    m[np.arange(out_size), i0] += w0
    m[np.arange(out_size), i1] += w1
    return m.astype(np.float32)


def bilinear_resize(x, out_h, out_w, align_corners=True, out_dtype=None):
    """Separable bilinear resize via two Pallas matmuls (NHWC)."""
    n, h, w, c = x.shape
    out_dtype = out_dtype or x.dtype
    wh = jnp.asarray(_bilinear_matrix(out_h, h, align_corners))
    ww = jnp.asarray(_bilinear_matrix(out_w, w, align_corners))
    xt = jnp.transpose(x, (1, 0, 2, 3)).reshape(h, n * w * c).astype(F32)
    y = pallas_matmul2d(wh, xt, out_dtype=F32)
    y = y.reshape(out_h, n, w, c).transpose(1, 0, 2, 3)
    yt = jnp.transpose(y, (2, 0, 1, 3)).reshape(w, n * out_h * c)
    z = pallas_matmul2d(ww, yt, out_dtype=F32)
    z = z.reshape(out_w, n, out_h, c).transpose(1, 2, 0, 3)
    return z.astype(out_dtype)


# -----------------------------------------------------------------------------
# Deterministic synthetic parameters (PyTorch layout -> prepared once)
# -----------------------------------------------------------------------------
class _KeyGen:
    def __init__(self, key):
        self._key = key

    def __call__(self):
        self._key, sub = jax.random.split(self._key)
        return sub


def _conv_w(kg, cout, cin, k):
    fan_in = cin * k * k
    return jax.random.normal(kg(), (cout, cin, k, k), F32) / np.sqrt(fan_in)


def _bn_params(kg, c):
    return dict(gamma=1.0 + 0.1 * jax.random.normal(kg(), (c,), F32),
                beta=0.1 * jax.random.normal(kg(), (c,), F32),
                mean=jnp.zeros((c,), F32),
                var=jnp.ones((c,), F32))


def _init_bottleneck(kg, inplanes, planes, groups, base_width, stride, dilation, downsample):
    width = int(planes * (base_width / 64.0)) * groups
    out_ch = planes * 4
    p = dict(
        conv1=prep_conv(_conv_w(kg, width, inplanes, 1), _bn_params(kg, width), relu=True),
        conv2=prep_group_conv(_conv_w(kg, width, width // groups, 3),
                              _bn_params(kg, width), groups, relu=True),
        conv3=prep_conv(_conv_w(kg, out_ch, width, 1), _bn_params(kg, out_ch), relu=False),
        stride=stride, dilation=dilation, down=None)
    if downsample:
        p['down'] = prep_conv(_conv_w(kg, out_ch, inplanes, 1),
                              _bn_params(kg, out_ch), relu=False)
    return p


def _init_layer(kg, inplanes, planes, blocks, stride, dilation, groups, base_width):
    out_ch = planes * 4
    need_down = (stride != 1) or (inplanes != out_ch)
    layer = [_init_bottleneck(kg, inplanes, planes, groups, base_width,
                              stride, dilation, need_down)]
    inplanes = out_ch
    for _ in range(1, blocks):
        layer.append(_init_bottleneck(kg, inplanes, planes, groups, base_width,
                                      1, dilation, False))
    return layer, inplanes


def _init_head(kg, num_classes):
    in_ch, oc = 2048, 256
    p = {}
    p['aspp_b0'] = prep_conv(_conv_w(kg, oc, in_ch, 1), _bn_params(kg, oc), relu=True)
    p['aspp_sep'] = []
    for rate in (12, 24, 36):
        p['aspp_sep'].append(dict(
            rate=rate,
            dw=prep_depthwise(_conv_w(kg, in_ch, 1, 3)),
            pw=prep_conv(_conv_w(kg, oc, in_ch, 1), _bn_params(kg, oc), relu=True)))
    p['aspp_pool'] = prep_conv(_conv_w(kg, oc, in_ch, 1), _bn_params(kg, oc), relu=True)
    p['aspp_proj'] = prep_conv(_conv_w(kg, oc, 5 * oc, 1), _bn_params(kg, oc), relu=True)
    p['aspp_out_dw'] = prep_depthwise(_conv_w(kg, oc, 1, 3))
    p['aspp_out_pw'] = prep_conv(_conv_w(kg, oc, oc, 1), _bn_params(kg, oc), relu=True)
    p['block1'] = prep_conv(_conv_w(kg, 48, 256, 1), _bn_params(kg, 48), relu=True)
    p['block2_dw'] = prep_depthwise(_conv_w(kg, 304, 1, 3))
    p['block2_pw'] = prep_conv(_conv_w(kg, oc, 304, 1), _bn_params(kg, oc), relu=True)
    p['seg'] = prep_conv(_conv_w(kg, num_classes, oc, 1), bn=None,
                         bias=0.01 * jax.random.normal(kg(), (num_classes,), F32),
                         relu=False)
    return p


def init_params(key, num_classes=12):
    kg = _KeyGen(key)
    groups, base_width = 32, 16                      # resnext101_32x16d
    enc = {'conv1': prep_conv(_conv_w(kg, 64, 3, 7), _bn_params(kg, 64), relu=True)}
    inplanes = 64
    # layers [3, 4, 23, 3]; output_stride 16 -> layer4 fully dilated (stride 1, dil 2)
    enc['layer1'], inplanes = _init_layer(kg, inplanes, 64, 3, 1, 1, groups, base_width)
    enc['layer2'], inplanes = _init_layer(kg, inplanes, 128, 4, 2, 1, groups, base_width)
    enc['layer3'], inplanes = _init_layer(kg, inplanes, 256, 23, 2, 1, groups, base_width)
    enc['layer4'], inplanes = _init_layer(kg, inplanes, 512, 3, 1, 2, groups, base_width)
    return dict(encoder=enc, head=_init_head(kg, num_classes))


# -----------------------------------------------------------------------------
# Forward pass
# -----------------------------------------------------------------------------
def _bottleneck_forward(x, p):
    out = conv1x1(x, p['conv1'])
    out = conv3x3_grouped(out, p['conv2'], stride=p['stride'], dilation=p['dilation'])
    if p['down'] is not None:
        xi = x if p['stride'] == 1 else x[:, ::p['stride'], ::p['stride'], :]
        identity = conv1x1(xi, p['down'])
    else:
        identity = x
    # conv3 + folded BN + residual add + ReLU fused in the matmul epilogue
    return conv1x1(out, p['conv3'], res=identity, relu=True)


def encoder_forward(x, enc):
    x = conv2d_dense(x, enc['conv1'], stride=2, padding=3)
    x = maxpool_3x3_s2_p1(x)
    for blk in enc['layer1']:
        x = _bottleneck_forward(x, blk)
    f_low = x                                        # features[-4]: 256 ch, stride 4
    for name in ('layer2', 'layer3', 'layer4'):
        for blk in enc[name]:
            x = _bottleneck_forward(x, blk)
    return f_low, x                                  # features[-1]: 2048 ch, stride 16


def head_forward(f_low, f_high, p):
    n, h, w, c = f_high.shape
    # ---- ASPP ----
    branches = [conv1x1(f_high, p['aspp_b0'])]
    for sep in p['aspp_sep']:
        t = depthwise_conv3x3(f_high, sep['dw'], dilation=sep['rate'])
        branches.append(conv1x1(t, sep['pw']))
    pooled = jnp.mean(f_high.astype(F32), axis=(1, 2), keepdims=True)
    pb = conv1x1(pooled.astype(BF16), p['aspp_pool'])
    # 1x1 -> HxW bilinear upsample is an exact broadcast
    branches.append(jnp.broadcast_to(pb, (n, h, w, pb.shape[-1])))
    y = jnp.concatenate(branches, axis=-1)           # (n,h,w,1280)
    y = conv1x1(y, p['aspp_proj'])
    # TODO(synk): ASPP Dropout(0.5) is eval-mode identity (inference-only forward).
    # ---- decoder aspp tail: SeparableConv2d(256,256,3) + BN + ReLU ----
    y = depthwise_conv3x3(y, p['aspp_out_dw'], dilation=1)
    y = conv1x1(y, p['aspp_out_pw'])
    # ---- x4 up (nn.UpsamplingBilinear2d -> align_corners=True) + high-res skip ----
    y = bilinear_resize(y, h * 4, w * 4, align_corners=True, out_dtype=BF16)
    hi = conv1x1(f_low, p['block1'])
    z = jnp.concatenate([y, hi], axis=-1)            # (n,4h,4w,304)
    z = depthwise_conv3x3(z, p['block2_dw'], dilation=1)
    z = conv1x1(z, p['block2_pw'])
    # ---- segmentation head: 1x1 conv (bias) + x4 bilinear up ----
    logits = conv1x1(z, p['seg'], out_dtype=F32)
    logits = bilinear_resize(logits, h * 16, w * 16, align_corners=True, out_dtype=F32)
    return logits


def smp_deeplabv3plus_forward(params, x_nchw):
    """x_nchw: (N, 3, H, W) float32 -> logits (N, num_classes, H, W)."""
    x = jnp.transpose(x_nchw, (0, 2, 3, 1)).astype(BF16)   # NCHW -> NHWC, bf16
    f_low, f_high = encoder_forward(x, params['encoder'])
    logits = head_forward(f_low, f_high, params['head'])
    return jnp.transpose(logits, (0, 3, 1, 2))              # NHWC -> NCHW


# -----------------------------------------------------------------------------

if __name__ == "__main__":
    key = jax.random.PRNGKey(0)
    pkey, xkey = jax.random.split(key)

    num_classes = 12
    params = init_params(pkey, num_classes=num_classes)
    x = jax.random.normal(xkey, (2, 3, 64, 64), F32)

    out = smp_deeplabv3plus_forward(params, x)
    out = jax.block_until_ready(out)

    assert out.shape == (2, num_classes, 64, 64), out.shape
    assert bool(jnp.all(jnp.isfinite(out)))
    print("KERNEL_OK")
</pallas_src>

<mosaic_0001>
module attributes {stable_mosaic.version = 11 : i64} {
  func.func @kernel(%arg0: i32, %arg1: i32, %arg2: i32, %arg3: i32, %arg4: memref<1x256x256xbf16, #tpu.memory_space<vmem>>, %arg5: memref<1x256x128xbf16, #tpu.memory_space<vmem>>, %arg6: memref<1x1x128xf32, #tpu.memory_space<vmem>>, %arg7: memref<1x256x128xbf16, #tpu.memory_space<vmem>>, %arg8: memref<1x256x128xf32, #tpu.memory_space<vmem>>) attributes {dimension_semantics = [#tpu.dimension_semantics<parallel>, #tpu.dimension_semantics<parallel>, #tpu.dimension_semantics<parallel>, #tpu.dimension_semantics<arbitrary>], iteration_bounds = array<i64: 1, 8, 1, 1>, scalar_prefetch = 0 : i64, scratch_operands = 1 : i64, tpu.core_type = #tpu.core_type<tc>, window_params = [{transform_indices = @transform_0, window_bounds = array<i64: 1, 256, 256>}, {transform_indices = @transform_1, window_bounds = array<i64: 1, 256, 128>}, {transform_indices = @transform_2, window_bounds = array<i64: 1, 1, 128>}, {transform_indices = @transform_3, window_bounds = array<i64: 1, 256, 128>}]} {
    %c0_i32 = arith.constant 0 : i32
    %0 = arith.cmpi eq, %arg3, %c0_i32 : i32
    %1 = arith.extui %0 : i1 to i32
    %c0_i32_0 = arith.constant 0 : i32
    %2 = arith.cmpi ne, %1, %c0_i32_0 : i32
    scf.if %2 {
      %cst_14 = arith.constant 0.000000e+00 : f32
      %12 = vector.broadcast %cst_14 : f32 to vector<1x256x128xf32>
      %c0_15 = arith.constant 0 : index
      %c0_16 = arith.constant 0 : index
      %c0_17 = arith.constant 0 : index
      %13 = vector.load %arg8[%c0_15, %c0_16, %c0_17] : memref<1x256x128xf32, #tpu.memory_space<vmem>>, vector<1x256x128xf32>
      tpu.vector_store %arg8[%c0_15, %c0_16, %c0_17], %12 {strides = array<i32>} : memref<1x256x128xf32, #tpu.memory_space<vmem>>, vector<1x256x128xf32>,
    } else {
    }
    %c0 = arith.constant 0 : index
    %c0_1 = arith.constant 0 : index
    %c0_2 = arith.constant 0 : index
    %3 = vector.load %arg8[%c0, %c0_1, %c0_2] : memref<1x256x128xf32, #tpu.memory_space<vmem>>, vector<1x256x128xf32>
    %c0_3 = arith.constant 0 : index
    %c0_4 = arith.constant 0 : index
    %c0_5 = arith.constant 0 : index
    %4 = vector.load %arg4[%c0_3, %c0_4, %c0_5] : memref<1x256x256xbf16, #tpu.memory_space<vmem>>, vector<1x256x256xbf16>
    %c0_6 = arith.constant 0 : index
    %c0_7 = arith.constant 0 : index
    %c0_8 = arith.constant 0 : index
    %5 = vector.load %arg5[%c0_6, %c0_7, %c0_8] : memref<1x256x128xbf16, #tpu.memory_space<vmem>>, vector<1x256x128xbf16>
    "tpu.trace_start"() <{level = 10 : i32, message = "gmk,gkn->gmn"}> : () -> ()
    %cst = arith.constant dense<0.000000e+00> : vector<1x256x128xf32>
    %6 = tpu.matmul %4, %5, %cst {dimension_numbers = #tpu.dot_dimension_numbers<[2], [1], [1], [2], [0, 0, 0, 1, 1, 2], [0], [0]>} : vector<1x256x256xbf16>, vector<1x256x128xbf16>, vector<1x256x128xf32> -> vector<1x256x128xf32>
    "tpu.trace_stop"() : () -> ()
    %7 = arith.addf %3, %6 : vector<1x256x128xf32>
    %c0_9 = arith.constant 0 : index
    %c0_10 = arith.constant 0 : index
    %c0_11 = arith.constant 0 : index
    %8 = vector.load %arg8[%c0_9, %c0_10, %c0_11] : memref<1x256x128xf32, #tpu.memory_space<vmem>>, vector<1x256x128xf32>
    tpu.vector_store %arg8[%c0_9, %c0_10, %c0_11], %7 {strides = array<i32>} : memref<1x256x128xf32, #tpu.memory_space<vmem>>, vector<1x256x128xf32>,
    %c0_i32_12 = arith.constant 0 : i32
    %9 = arith.cmpi eq, %arg3, %c0_i32_12 : i32
    %10 = arith.extui %9 : i1 to i32
    %c0_i32_13 = arith.constant 0 : i32
    %11 = arith.cmpi ne, %10, %c0_i32_13 : i32
    scf.if %11 {
      %c0_14 = arith.constant 0 : index
      %c0_15 = arith.constant 0 : index
      %c0_16 = arith.constant 0 : index
      %12 = vector.load %arg8[%c0_14, %c0_15, %c0_16] : memref<1x256x128xf32, #tpu.memory_space<vmem>>, vector<1x256x128xf32>
      %c0_17 = arith.constant 0 : index
      %c0_18 = arith.constant 0 : index
      %c0_19 = arith.constant 0 : index
      %13 = vector.load %arg6[%c0_17, %c0_18, %c0_19] : memref<1x1x128xf32, #tpu.memory_space<vmem>>, vector<1x1x128xf32>
      %14 = vector.broadcast %13 : vector<1x1x128xf32> to vector<1x256x128xf32>
      %15 = arith.addf %12, %14 : vector<1x256x128xf32>
      %cst_20 = arith.constant 0.000000e+00 : f32
      %16 = vector.broadcast %cst_20 : f32 to vector<1x256x128xf32>
      %17 = arith.maximumf %15, %16 : vector<1x256x128xf32>
      %18 = arith.truncf %17 : vector<1x256x128xf32> to vector<1x256x128xbf16>
      %c0_21 = arith.constant 0 : index
      %c0_22 = arith.constant 0 : index
      %c0_23 = arith.constant 0 : index
      %19 = vector.load %arg7[%c0_21, %c0_22, %c0_23] : memref<1x256x128xbf16, #tpu.memory_space<vmem>>, vector<1x256x128xbf16>
      tpu.vector_store %arg7[%c0_21, %c0_22, %c0_23], %18 {strides = array<i32>} : memref<1x256x128xbf16, #tpu.memory_space<vmem>>, vector<1x256x128xbf16>,
    } else {
    }
    return
  }
  func.func @transform_0(%arg0: i32, %arg1: i32, %arg2: i32, %arg3: i32) -> (i32, i32, i32) {
    %c0_i32 = arith.constant 0 : i32
    return %arg0, %arg1, %arg3 : i32, i32, i32
  }
  func.func @transform_1(%arg0: i32, %arg1: i32, %arg2: i32, %arg3: i32) -> (i32, i32, i32) {
    %c0_i32 = arith.constant 0 : i32
    return %arg0, %arg3, %arg2 : i32, i32, i32
  }
  func.func @transform_2(%arg0: i32, %arg1: i32, %arg2: i32, %arg3: i32) -> (i32, i32, i32) {
    %c0_i32 = arith.constant 0 : i32
    %c0_i32_0 = arith.constant 0 : i32
    return %arg0, %c0_i32, %arg2 : i32, i32, i32
  }
  func.func @transform_3(%arg0: i32, %arg1: i32, %arg2: i32, %arg3: i32) -> (i32, i32, i32) {
    %c0_i32 = arith.constant 0 : i32
    return %arg0, %arg1, %arg2 : i32, i32, i32
  }
}

</mosaic_0001>

<bundles_post_ra>
// kernel: tpu_custom_call.1
= control target key start
LH: loop header
LB: loop body
LE: loop exit
PB: predicated region body
PF: predicated region fallthrough
CT: control target
= control target key end

     0   :  { %8 = vsyncpa [#allocation4], 0  ;;  %s2295_s0 = inlined_call_operand.hbm [shape: bf16[1,2048,256], index: 0, kind: input, shape index: {}]   ;;  %s2296_s1 = inlined_call_operand.hbm [shape: bf16[1,256,128], index: 1, kind: input, shape index: {}]   ;;  %s2297_s2 = inlined_call_operand.vmem [shape: f32[1,1,128], index: 2, kind: input, shape index: {}]   ;;  %s2298_s3 = inlined_call_operand.hbm [shape: bf16[1,2048,128], index: 3, kind: output, shape index: {}]  }
   0x1   :  { %10 = vsyncpa [#allocation4 + $0x1], 0 }
   0x2   :  { %11 = vsyncpa [#allocation7], 0 }
   0x3   :  { %12 = vsyncpa [#allocation5], 0 }
   0x4   :  { %14 = vsyncpa [#allocation5 + $0x1], 0  ;;  %s1987_s12 = smov 0   ;;  %s1989_s13 = smov 0  }
   0x5   :  { %s1991_s14 = smov 0   ;;  %s1993_s15 = smov 0  }
   0x6   :  { %s1995_s16 = smov 0   ;;  %s1997_s17 = smov 0  }
   0x7 LB: > { %s1311_s18 = sadd.s32 4294967295, %s1956_s17   ;;  %s1312_s19 = sadd.s32 4294967294, %s1956_s17   ;;  %s1956_s17 = sphi %s1997_s17, %s20_s17   ;;  %s1952_s16 = sphi %s1995_s16, %s2321_s16   ;;  %s1948_s15 = sphi %s1993_s15, %s2320_s15   ;;  %s1944_s14 = sphi %s1991_s14, %s2319_s14   ;;  %s1940_s13 = sphi %s1989_s13, %s2318_s13   ;;  %s1936_s12 = sphi %s1987_s12, %s2317_s12  }
   0x8   : > { %p70_p0 = scmp.ne.s32.totalorder %s1940_s13, %s1936_s12  ;;  %p2021_p1 = scmp.eq.s32.totalorder %s1311_s18, 0 }
   0x9   : > { %p2025_p2 = scmp.eq.s32.totalorder %s1311_s18, 7  ;;  %p162_p3 = scmp.eq.s32.totalorder %s1312_s19, 7 }
   0xa   : > { %s2303_s20 = scalar_select %p2021_p1, 1, 0 }
   0xb   : > { %s2304_s21 = scalar_select %p2025_p2, 1, 0 }
   0xc   : > { %p2031_p4 = por %p2021_p1, %p70_p0  ;;  %p1313_p5 = scmp.ge.s32.totalorder %s1956_s17, 1 }
   0xd   : > { %p2036_p6 = por %p162_p3, %p70_p0  ;;  %p169_p7 = scmp.lt.s32.totalorder %s1956_s17, 9 }
   0xe   : > { %s2305_s22 = scalar_select %p2031_p4, 1, 0 }
   0xf   : > { %s2306_s23 = scalar_select %p2036_p6, 1, 0 }
  0x10   : > { %p2041_p8 = pnand %p1313_p5, %p169_p7  ;;  %s1958_s25 = smov [#allocation6]  }
  0x11   : > { %s187_s26 = sshll.u32 %s1958_s25, 4  ;;  %s42_s28 = sadd.s32 1, %s1952_s16  ;;  %s188_s26 = int_to_ptr.vmem [resolvable:$true] %s187_s26 }
  0x12   : > { %s2307_s24 = scalar_select %p2041_p8, 1, 0 }
  0x13   : > { %p1677_p9 = pneg %p2041_p8  ;;  %s1812_s4 = scalar_lea.hbm %s2296_s1, 2048 }
  0x14   : > { %p1813_p11 = scmp.ne.s32.totalorder %s2296_s1, %s1812_s4  ;;  %p1819_p3 = scmp.lt.u32.totalorder %s1812_s4, %s2296_s1 }
  0x15   : > { %p2049_p10 = pnand %p1677_p9, %p2021_p1 }
  0x17   : > { %p1814_p12 = pneg %p2049_p10 }
  0x19   : > { %p1815_p13 = pnand %p1814_p12, %p1813_p11 }
  0x1b   : > { %p1816_p0 = pneg %p1815_p13 }
  0x1d   : > { %p1821_p5 = pnand %p1819_p3, %p1816_p0 }
  0x1f   : > { %1824 = shalt.err (!%p1821_p5)
}
  0x20   : > { %s1825_s9 = scalar_lea.vmem %s188_s26, 2048  ;;  %p1833_p1 = scmp.lt.s32.totalorder %s188_s26, %s188_s26 }
  0x21   : > { %p1826_p7 = scmp.ne.s32.totalorder %s188_s26, %s1825_s9  ;;  %p1834_p4 = scmp.lt.s32.totalorder %s1825_s9, %s1825_s9 }
  0x23   : > { %p1828_p9 = pnand %p1826_p7, %p1814_p12  ;;  %p1835_p8 = por %p1834_p4, %p1833_p1 }
  0x25   : > { %p1829_p6 = pneg %p1828_p9 }
  0x27   : > { %p1836_p2 = pnand %p1835_p8, %p1829_p6 }
  0x29   : > { %1839 = shalt.err (!%p1836_p2)
}
  0x2a   : > { %s1959_s10 = smov 64   ;;  %s1960_s11 = smov 4  }
  0x2b   : > { %1680 = dma.hbm_to_vmem [thread:$0]  (!%p2049_p10), %s2296_s1, 2048, %s188_s26, [#allocation7], %s1959_s10, %s1959_s10, %s1960_s11  }
  0x2c   : > { %p44_p1 = scmp.ge.s32.totalorder %s42_s28, 8  ;;  %s57_s25 = sadd.s32 1, %s1944_s14 }
  0x2d   : > { %p64_p2 = scmp.ne.s32.totalorder %s1944_s14, %s1940_s13  ;;  %p65_p4 = scmp.eq.s32.totalorder %s1956_s17, 0 }
  0x2e   : > { %s2323_s28 = smov (%p44_p1, %s42_s28), 0  ;;  %p2310_p8 = scmp.ne.s32.totalorder %s2304_s21, 0 }
  0x2f   : > { %p2076_p6 = por %p65_p4, %p64_p2  ;;  %s51_s27 = ssub.s32 %s1952_s16, %s2323_s28 }
  0x30   : > { %p2082_p11 = por %p2310_p8, %p64_p2  ;;  %p1690_p12 = scmp.lt.s32.totalorder %s1956_s17, 8 }
  0x31   : > { %p55_p10 = scmp.eq.s32.totalorder %s51_s27, 0  ;;  %s210_s26 = sand.u32 1, %s1944_s14  }
  0x32   : > { %s1317_s4 = sshll.u32 %s210_s26, 8  ;;  %s1412_s6 = sshll.u32 %s1952_s16, 12 }
  0x33   : > { %s2091_s5 = scalar_select %p55_p10, %s1944_s14, %s57_s25  }
  0x34   : > { %s2097_s9 = scalar_lea.hbm %s2295_s0, %s1412_s6  ;;  %s214_s21 = scalar_lea.vmem [#allocation3], %s1317_s4 }
  0x35   : > { %s226_s10 = sshll.u32 %s214_s21, 4  ;;  %p2103_p13 = pnand %p1690_p12, %p2076_p6  ;;  %s2099_s10 = int_to_ptr.vmem [resolvable:$true] %s226_s10 }
  0x36   : > { %s2107_s18 = scalar_lea.sflag [#allocation4], %s210_s26  ;;  %s1840_s19 = scalar_lea.hbm %s2097_s9, 4096 }
  0x37   : > { %p1841_p0 = scmp.ne.s32.totalorder %s2097_s9, %s1840_s19  ;;  %p1842_p3 = pneg %p2103_p13 }
  0x38   : > { %s1845_s29 = scalar_lea.hbm %s2295_s0, 32768  ;;  %p1846_p9 = scmp.lt.u32.totalorder %s2097_s9, %s2295_s0 }
  0x39   : > { %p1843_p5 = pnand %p1842_p3, %p1841_p0  ;;  %p1847_p1 = scmp.lt.u32.totalorder %s1845_s29, %s1840_s19 }
  0x3a   : > { %p1849_p4 = scmp.lt.u32.totalorder %s1840_s19, %s2097_s9 }
  0x3b   : > { %p1844_p7 = pneg %p1843_p5  ;;  %p1848_p2 = por %p1847_p1, %p1846_p9 }
  0x3d   : > { %p1850_p6 = por %p1849_p4, %p1848_p2 }
  0x3f   : > { %p1851_p8 = pnand %p1850_p6, %p1844_p7 }
  0x41   : > { %1854 = shalt.err (!%p1851_p8)
}
  0x42   : > { %s1855_s26 = scalar_lea.vmem %s2099_s10, 4096  ;;  %s1961_s7 = smov [#allocation3]  }
  0x43   : > { %p1856_p12 = scmp.ne.s32.totalorder %s2099_s10, %s1855_s26  ;;  %s1860_s8 = sshll.u32 %s1961_s7, 4  ;;  %s1861_s8 = int_to_ptr.vmem [resolvable:$false] %s1860_s8 }
  0x44   : > { %s1862_s21 = scalar_lea.vmem %s1861_s8, 8192  ;;  %p1863_p5 = scmp.lt.s32.totalorder %s2099_s10, %s1861_s8 }
  0x45   : > { %p1858_p10 = pnand %p1856_p12, %p1842_p3  ;;  %p1864_p9 = scmp.lt.s32.totalorder %s1862_s21, %s1855_s26 }
  0x47   : > { %p1859_p0 = pneg %p1858_p10  ;;  %p1865_p1 = por %p1864_p9, %p1863_p5 }
  0x49   : > { %p1866_p2 = pnand %p1865_p1, %p1859_p0 }
  0x4b   : > { %1869 = shalt.err (!%p1866_p2)
}
  0x4c   : > { %s1962_s19 = smov 128   ;;  %s1963_s25 = smov 8  }
  0x4d   : > { %1684 = dma.hbm_to_vmem [thread:$0]  (!%p2103_p13), %s2097_s9, 4096, %s2099_s10, %s2107_s18, %s1962_s19, %s1962_s19, %s1963_s25  }
  0x4e   : > { %p2313_p3 = scmp.ne.s32.totalorder %s2307_s24, 0 }
  0x4f   : > { %s2138_s27 = sand.u32 (!%p2313_p3), 1, %s1940_s13   ;;  %p2314_p7 = scmp.ne.s32.totalorder (!%p2313_p3), %s2305_s22, 0 }
  0x50   : > { %238 = sbr.rel (%p2313_p3) target bundleno = 419 (0x1a3), region = 32  ;;  %s1322_s29 = sshll.u32 (!%p2313_p3), %s2138_s27, 8 }
  0x51   : > { %s241_s4 = scalar_lea.sflag (!%p2313_p3), [#allocation4], %s2138_s27  ;;  %s2142_s6 = scalar_lea.vmem (!%p2313_p3), [#allocation3], %s1322_s29 }
  0x57   : > { %1923 = dma.done.wait (%p2314_p7), %s241_s4, 4096  }
  0x58   : > { %1925 = vsyncadd (%p2314_p7), %s241_s4, 4294963200  ;;  %p2315_p13 = scmp.ne.s32.totalorder %s2303_s20, 0 }
  0x5a   : > { %1927 = dma.done.wait (%p2315_p13), [#allocation7], 2048  }
  0x5b   : > { %1929 = vsyncadd (%p2315_p13), [#allocation7], 4294965248  ;;  %v1748_v0 = vld [vmem:[#allocation6 + $0x40] sm:$0xff]   ;;  %v1750_v2 = vld [vmem:[#allocation6 + $0x48] sm:$0xff]   ;;  %s1324_s24 = sshll.u32 %s2138_s27, 7  ;;  %s1445_s10 = sshll.u32 %s1948_s15, 11 }
  0x5c   : > { %v1749_v1 = vld [vmem:[#allocation6] sm:$0xff]   ;;  %1541 = vmatprep.subr.bf16.mxu0 %v1748_v0  ;;  %1653 = vmatprep.subr.bf16.mxu1 %v1748_v0  ;;  %v1751_v3 = vld [vmem:[#allocation6 + $0x8] sm:$0xff]   ;;  %v1752_v4 = vld [vmem:[#allocation6 + $0x50] sm:$0xff]   ;;  %s2194_s9 = scalar_lea.vmem [#allocation8], %s1324_s24  ;;  %s2243_s7 = scalar_lea.hbm %s2298_s3, %s1445_s10 }
  0x5d   : > { %1542 = vmatpush3.bf16.msra.mxu0 %v1749_v1  ;;  %1661 = vmatpush3.bf16.msra.mxu1 %v1749_v1  ;;  %v1753_v5 = vld [vmem:[#allocation6 + $0x10] sm:$0xff]   ;;  %v1754_v6 = vld [vmem:[#allocation6 + $0x58] sm:$0xff]   ;;  %v1756_v8 = vld [vmem:[#allocation6 + $0x60] sm:$0xff]   ;;  %s1184_s11 = sshll.u32 %s2194_s9, 4  ;;  %s1168_s15 = scalar_lea.sflag [#allocation5], %s2138_s27  ;;  %s2245_s11 = int_to_ptr.vmem [resolvable:$true] %s1184_s11 }
  0x5e   : > { %1543 = vmatprep.subr.bf16.mxu0 %v1750_v2  ;;  %1654 = vmatprep.subr.bf16.mxu1 %v1750_v2  ;;  %v1755_v7 = vld [vmem:[#allocation6 + $0x18] sm:$0xff]   ;;  %v1757_v9 = vld [vmem:[#allocation6 + $0x20] sm:$0xff]   ;;  %v1758_v10 = vld [vmem:[#allocation6 + $0x68] sm:$0xff]   ;;  %s1870_s8 = scalar_lea.vmem %s2245_s11, 2048  ;;  %s1964_s21 = smov [#allocation8]  }
  0x5f   : > { %v1766_v11 = vld [vmem:[%s2142_s6 + $0x4] ss:$8 sps:$4 sm:$0xff]   ;;  %v1760_v14 = vld [vmem:[#allocation6 + $0x70] sm:$0xff]   ;;  %v1762_v16 = vld [vmem:[#allocation6 + $0x78] sm:$0xff]   ;;  %p1871_p4 = scmp.ne.s32.totalorder %s2245_s11, %s1870_s8  ;;  %s1874_s19 = sshll.u32 %s1964_s21, 4  ;;  %s1875_s19 = int_to_ptr.vmem [resolvable:$false] %s1874_s19 }
  0x60   : > { %v1769_v12 = vld [vmem:[%s2142_s6 + $0x84] ss:$8 sps:$4 sm:$0xff]   ;;  %708 = vmatprep.mubr.bf16.mxu0 %v1766_v11  ;;  %v1761_v15 = vld [vmem:[#allocation6 + $0x30] sm:$0xff]   ;;  %v1763_v17 = vld [vmem:[#allocation6 + $0x38] sm:$0xff]   ;;  %s1876_s25 = scalar_lea.vmem %s1875_s19, 4096  ;;  %p1877_p12 = scmp.lt.s32.totalorder %s2245_s11, %s1875_s19 }
  0x61   : > { %1544 = vmatpush3.bf16.msra.mxu0 %v1751_v3  ;;  %1662 = vmatpush3.bf16.msra.mxu1 %v1751_v3  ;;  %v1759_v13 = vld [vmem:[#allocation6 + $0x28] sm:$0xff]   ;;  %v1770_v20 = vld [vmem:[%s2142_s6 + $0x14] ss:$8 sps:$4 sm:$0xff]   ;;  %v1774_v22 = vld [vmem:[%s2142_s6 + $0x10] ss:$8 sps:$4 sm:$0xff]   ;;  %p1872_p6 = pnand %p1871_p4, %p2082_p11  ;;  %p1878_p10 = scmp.lt.s32.totalorder %s1876_s25, %s1870_s8 }
  0x62   : > { %1545 = vmatprep.subr.bf16.mxu0 %v1752_v4  ;;  %1655 = vmatprep.subr.bf16.mxu1 %v1752_v4  ;;  %v1764_v18 = vld [vmem:[%s2142_s6] ss:$8 sps:$4 sm:$0xff]   ;;  %v1772_v21 = vld [vmem:[%s2142_s6 + $0x94] ss:$8 sps:$4 sm:$0xff]   ;;  %v1775_v23 = vld [vmem:[%s2142_s6 + $0x90] ss:$8 sps:$4 sm:$0xff]  }
  0x63   : > { %772 = vmatprep.mubr.bf16.mxu1 %v1769_v12  ;;  %v1767_v19 = vld [vmem:[%s2142_s6 + $0x80] ss:$8 sps:$4 sm:$0xff]   ;;  %v1776_v24 = vld [vmem:[%s2142_s6 + $0x24] ss:$8 sps:$4 sm:$0xff]   ;;  %v1782_v28 = vld [vmem:[%s2142_s6 + $0x34] ss:$8 sps:$4 sm:$0xff]   ;;  %p1873_p8 = pneg %p1872_p6  ;;  %p1879_p0 = por %p1878_p10, %p1877_p12 }
  0x64   : > { %v1778_v25 = vld [vmem:[%s2142_s6 + $0xa4] ss:$8 sps:$4 sm:$0xff]   ;;  %v1780_v26 = vld [vmem:[%s2142_s6 + $0x20] ss:$8 sps:$4 sm:$0xff]   ;;  %v1784_v29 = vld [vmem:[%s2142_s6 + $0xb4] ss:$8 sps:$4 sm:$0xff]  }
  0x65   : > { %1546 = vmatpush3.bf16.msra.mxu0 %v1753_v5  ;;  %1663 = vmatpush3.bf16.msra.mxu1 %v1753_v5  ;;  %v1781_v27 = vld [vmem:[%s2142_s6 + $0xa0] ss:$8 sps:$4 sm:$0xff]   ;;  %v1786_v30 = vld [vmem:[%s2142_s6 + $0x30] ss:$8 sps:$4 sm:$0xff]   ;;  %v1788_v32 = vld [vmem:[%s2142_s6 + $0x44] ss:$8 sps:$4 sm:$0xff]   ;;  %p1880_p5 = pnand %p1879_p0, %p1873_p8 }
  0x66   : > { %1547 = vmatprep.subr.bf16.mxu0 %v1754_v6  ;;  %1656 = vmatprep.subr.bf16.mxu1 %v1754_v6  ;;  %v1787_v31 = vld [vmem:[%s2142_s6 + $0xb0] ss:$8 sps:$4 sm:$0xff]   ;;  %v1790_v33 = vld [vmem:[%s2142_s6 + $0xc4] ss:$8 sps:$4 sm:$0xff]   ;;  %v1792_v34 = vld [vmem:[%s2142_s6 + $0x40] ss:$8 sps:$4 sm:$0xff]  }
  0x67   : > { %v1793_v35 = vld [vmem:[%s2142_s6 + $0xc0] ss:$8 sps:$4 sm:$0xff]   ;;  %v1794_v36 = vld [vmem:[%s2142_s6 + $0x54] ss:$8 sps:$4 sm:$0xff]   ;;  %v1798_v38 = vld [vmem:[%s2142_s6 + $0x50] ss:$8 sps:$4 sm:$0xff]  }
  0x68   : > { %v1796_v37 = vld [vmem:[%s2142_s6 + $0xd4] ss:$8 sps:$4 sm:$0xff]   ;;  %v1799_v39 = vld [vmem:[%s2142_s6 + $0xd0] ss:$8 sps:$4 sm:$0xff]   ;;  %v1800_v40 = vld [vmem:[%s2142_s6 + $0x64] ss:$8 sps:$4 sm:$0xff]  }
  0x69   : > { %1548 = vmatpush3.bf16.msra.mxu0 %v1755_v7  ;;  %1664 = vmatpush3.bf16.msra.mxu1 %v1755_v7  ;;  %v1802_v41 = vld [vmem:[%s2142_s6 + $0xe4] ss:$8 sps:$4 sm:$0xff]   ;;  %v1804_v42 = vld [vmem:[%s2142_s6 + $0x60] ss:$8 sps:$4 sm:$0xff]   ;;  %v1806_v44 = vld [vmem:[%s2142_s6 + $0x74] ss:$8 sps:$4 sm:$0xff]  }
  0x6a   : > { %1549 = vmatprep.subr.bf16.mxu0 %v1756_v8  ;;  %1657 = vmatprep.subr.bf16.mxu1 %v1756_v8  ;;  %v1805_v43 = vld [vmem:[%s2142_s6 + $0xe0] ss:$8 sps:$4 sm:$0xff]   ;;  %v1808_v45 = vld [vmem:[%s2142_s6 + $0xf4] ss:$8 sps:$4 sm:$0xff]   ;;  %v1810_v46 = vld [vmem:[%s2142_s6 + $0x70] ss:$8 sps:$4 sm:$0xff]  }
  0x6b   : > { %v1811_v47 = vld [vmem:[%s2142_s6 + $0xf0] ss:$8 sps:$4 sm:$0xff]   ;;  %v2187_v51 = vld [vmem:[%s2297_s2] ss:$0 sm:$0xff] }
  0x6d   : > { %1550 = vmatpush3.bf16.msra.mxu0 %v1757_v9  ;;  %1665 = vmatpush3.bf16.msra.mxu1 %v1757_v9 }
  0x6e   : > { %1551 = vmatprep.subr.bf16.mxu0 %v1758_v10  ;;  %1658 = vmatprep.subr.bf16.mxu1 %v1758_v10 }
  0x71   : > { %1552 = vmatpush3.bf16.msra.mxu0 %v1759_v13  ;;  %1666 = vmatpush3.bf16.msra.mxu1 %v1759_v13 }
  0x72   : > { %1553 = vmatprep.subr.bf16.mxu0 %v1760_v14  ;;  %1659 = vmatprep.subr.bf16.mxu1 %v1760_v14 }
  0x75   : > { %1554 = vmatpush3.bf16.msra.mxu0 %v1761_v15  ;;  %1667 = vmatpush3.bf16.msra.mxu1 %v1761_v15 }
  0x76   : > { %1555 = vmatprep.subr.bf16.mxu0 %v1762_v16  ;;  %1660 = vmatprep.subr.bf16.mxu1 %v1762_v16 }
  0x79   : > { %1556 = vmatpush3.bf16.msra.mxu0 %v1763_v17  ;;  %1668 = vmatpush3.bf16.msra.mxu1 %v1763_v17 }
  0x7c   : > { %709 = vmatmul.mubr.bf16.vlgmr.msra.gmra.mrb[0].mxu0 %v1764_v18  ;;  %773 = vmatmul.mubr.bf16.vlgmr.msra.gmra.mrb[0].mxu1 %v1767_v19 }
  0x7d   : > { %716 = vmatprep.mubr.bf16.mxu0 %v1770_v20  ;;  %780 = vmatprep.mubr.bf16.mxu1 %v1772_v21 }
  0x84   : > { %717 = vmatmul.mubr.bf16.gmra.mrb[4].mxu0 %v1774_v22  ;;  %781 = vmatmul.mubr.bf16.gmra.mrb[4].mxu1 %v1775_v23 }
  0x85   : > { %724 = vmatprep.mubr.bf16.mxu0 %v1776_v24  ;;  %788 = vmatprep.mubr.bf16.mxu1 %v1778_v25 }
  0x8c   : > { %725 = vmatmul.mubr.bf16.gmra.mrb[8].mxu0 %v1780_v26  ;;  %789 = vmatmul.mubr.bf16.gmra.mrb[8].mxu1 %v1781_v27 }
  0x8d   : > { %732 = vmatprep.mubr.bf16.mxu0 %v1782_v28  ;;  %796 = vmatprep.mubr.bf16.mxu1 %v1784_v29 }
  0x94   : > { %733 = vmatmul.mubr.bf16.gmra.mrb[12].mxu0 %v1786_v30  ;;  %797 = vmatmul.mubr.bf16.gmra.mrb[12].mxu1 %v1787_v31 }
  0x95   : > { %740 = vmatprep.mubr.bf16.mxu0 %v1788_v32  ;;  %804 = vmatprep.mubr.bf16.mxu1 %v1790_v33 }
  0x9c   : > { %741 = vmatmul.mubr.bf16.gmra.mrb[16].mxu0 %v1792_v34  ;;  %805 = vmatmul.mubr.bf16.gmra.mrb[16].mxu1 %v1793_v35 }
  0x9d   : > { %748 = vmatprep.mubr.bf16.mxu0 %v1794_v36  ;;  %812 = vmatprep.mubr.bf16.mxu1 %v1796_v37 }
  0xa4   : > { %749 = vmatmul.mubr.bf16.gmra.mrb[20].mxu0 %v1798_v38  ;;  %813 = vmatmul.mubr.bf16.gmra.mrb[20].mxu1 %v1799_v39 }
  0xa5   : > { %756 = vmatprep.mubr.bf16.mxu0 %v1800_v40  ;;  %820 = vmatprep.mubr.bf16.mxu1 %v1802_v41 }
  0xac   : > { %757 = vmatmul.mubr.bf16.gmra.mrb[24].mxu0 %v1804_v42  ;;  %821 = vmatmul.mubr.bf16.gmra.mrb[24].mxu1 %v1805_v43 }
  0xad   : > { %764 = vmatprep.mubr.bf16.mxu0 %v1806_v44  ;;  %828 = vmatprep.mubr.bf16.mxu1 %v1808_v45 }
  0xb4   : > { %765 = vmatmul.mubr.bf16.gmra.mrb[28].mxu0 %v1810_v46  ;;  %829 = vmatmul.mubr.bf16.gmra.mrb[28].mxu1 %v1811_v47 }
 0x14f   : > { %v1557_v48 = vpop.f32.mrb[0].mxu0  ;;  %v1605_v49 = vpop.f32.mrb[0].mxu1 }
 0x150   : > { %v1558_v50 = vpop.f32.mrb[1].mxu0  ;;  %v1606_v52 = vpop.f32.mrb[1].mxu1 }
 0x151   : > { %v1559_v53 = vadd.f32 %v1558_v50, %v1557_v48  ;;  %v1607_v54 = vadd.f32 %v1606_v52, %v1605_v49  ;;  %v1560_v55 = vpop.f32.mrb[2].mxu0  ;;  %v1608_v56 = vpop.f32.mrb[2].mxu1 }
 0x152   : > { %v1561_v57 = vpop.f32.mrb[3].mxu0  ;;  %v1609_v58 = vpop.f32.mrb[3].mxu1 }
 0x153   : > { %v943_v59 = vadd.f32 %v1559_v53, %v2187_v51  ;;  %v959_v60 = vadd.f32 %v1607_v54, %v2187_v51  ;;  %v1562_v61 = vadd.f32 %v1561_v57, %v1560_v55  ;;  %v1610_v62 = vadd.f32 %v1609_v58, %v1608_v56 }
 0x155   : > { %v944_v63 = vadd.f32 %v1562_v61, %v2187_v51  ;;  %v960_v0 = vadd.f32 %v1610_v62, %v2187_v51  ;;  %v975_v1 = vmax.f32 %v943_v59, 0.0  ;;  %v991_v2 = vmax.f32 %v959_v60, 0.0 }
 0x157   : > { %v976_v3 = vmax.f32 %v944_v63, 0.0  ;;  %v992_v4 = vmax.f32 %v960_v0, 0.0  ;;  %v1563_v5 = vpop.f32.mrb[4].mxu0  ;;  %v1611_v6 = vpop.f32.mrb[4].mxu1 }
 0x158   : > { %v1564_v7 = vpop.f32.mrb[5].mxu0  ;;  %v1612_v8 = vpop.f32.mrb[5].mxu1 }
 0x159   : > { %v1449_v9 = vpack.c.bf16 %v976_v3, %v975_v1  ;;  %v1489_v10 = vpack.c.bf16 %v992_v4, %v991_v2  ;;  %v1565_v11 = vadd.f32 %v1564_v7, %v1563_v5  ;;  %v1613_v12 = vadd.f32 %v1612_v8, %v1611_v6  ;;  %v1566_v13 = vpop.f32.mrb[6].mxu0  ;;  %v1614_v14 = vpop.f32.mrb[6].mxu1 }
 0x15a   : > { %v1567_v15 = vpop.f32.mrb[7].mxu0  ;;  %v1615_v16 = vpop.f32.mrb[7].mxu1 }
 0x15b   : > { %1450 = vst [vmem:[%s2194_s9] sm:$0xff] %v1449_v9   ;;  %1533 = vst [vmem:[%s2194_s9 + $0x40] sm:$0xff] %v1489_v10   ;;  %v945_v17 = vadd.f32 %v1565_v11, %v2187_v51  ;;  %v961_v18 = vadd.f32 %v1613_v12, %v2187_v51  ;;  %v1568_v19 = vadd.f32 %v1567_v15, %v1566_v13 }
 0x15c   : > { %v1616_v20 = vadd.f32 %v1615_v16, %v1614_v14 }
 0x15d   : > { %v946_v21 = vadd.f32 %v1568_v19, %v2187_v51  ;;  %v977_v23 = vmax.f32 %v945_v17, 0.0  ;;  %v993_v24 = vmax.f32 %v961_v18, 0.0 }
 0x15e   : > { %v962_v22 = vadd.f32 %v1616_v20, %v2187_v51 }
 0x15f   : > { %v978_v25 = vmax.f32 %v946_v21, 0.0  ;;  %v1569_v27 = vpop.f32.mrb[8].mxu0  ;;  %v1617_v28 = vpop.f32.mrb[8].mxu1 }
 0x160   : > { %v994_v26 = vmax.f32 %v962_v22, 0.0  ;;  %v1570_v29 = vpop.f32.mrb[9].mxu0  ;;  %v1618_v30 = vpop.f32.mrb[9].mxu1 }
 0x161   : > { %v1454_v31 = vpack.c.bf16 %v978_v25, %v977_v23  ;;  %v1571_v33 = vadd.f32 %v1570_v29, %v1569_v27  ;;  %v1619_v34 = vadd.f32 %v1618_v30, %v1617_v28  ;;  %v1572_v35 = vpop.f32.mrb[10].mxu0  ;;  %v1620_v36 = vpop.f32.mrb[10].mxu1 }
 0x162   : > { %v1494_v32 = vpack.c.bf16 %v994_v26, %v993_v24  ;;  %v1573_v37 = vpop.f32.mrb[11].mxu0  ;;  %v1621_v38 = vpop.f32.mrb[11].mxu1 }
 0x163   : > { %1526 = vst [vmem:[%s2194_s9 + $0x8] sm:$0xff] %v1454_v31   ;;  %v947_v39 = vadd.f32 %v1571_v33, %v2187_v51  ;;  %v963_v40 = vadd.f32 %v1619_v34, %v2187_v51  ;;  %v1574_v41 = vadd.f32 %v1573_v37, %v1572_v35  ;;  %v1622_v42 = vadd.f32 %v1621_v38, %v1620_v36 }
 0x164   : > { %1534 = vst [vmem:[%s2194_s9 + $0x48] sm:$0xff] %v1494_v32  }
 0x165   : > { %v948_v43 = vadd.f32 %v1574_v41, %v2187_v51  ;;  %v964_v44 = vadd.f32 %v1622_v42, %v2187_v51  ;;  %v979_v45 = vmax.f32 %v947_v39, 0.0  ;;  %v995_v46 = vmax.f32 %v963_v40, 0.0 }
 0x167   : > { %v980_v47 = vmax.f32 %v948_v43, 0.0  ;;  %v996_v48 = vmax.f32 %v964_v44, 0.0  ;;  %v1575_v49 = vpop.f32.mrb[12].mxu0  ;;  %v1623_v50 = vpop.f32.mrb[12].mxu1 }
 0x168   : > { %v1576_v52 = vpop.f32.mrb[13].mxu0  ;;  %v1624_v53 = vpop.f32.mrb[13].mxu1 }
 0x169   : > { %v1459_v54 = vpack.c.bf16 %v980_v47, %v979_v45  ;;  %v1499_v55 = vpack.c.bf16 %v996_v48, %v995_v46  ;;  %v1577_v56 = vadd.f32 %v1576_v52, %v1575_v49  ;;  %v1625_v57 = vadd.f32 %v1624_v53, %v1623_v50  ;;  %v1578_v58 = vpop.f32.mrb[14].mxu0  ;;  %v1626_v59 = vpop.f32.mrb[14].mxu1 }
 0x16a   : > { %v1579_v60 = vpop.f32.mrb[15].mxu0  ;;  %v1627_v61 = vpop.f32.mrb[15].mxu1 }
 0x16b   : > { %1527 = vst [vmem:[%s2194_s9 + $0x10] sm:$0xff] %v1459_v54   ;;  %1535 = vst [vmem:[%s2194_s9 + $0x50] sm:$0xff] %v1499_v55   ;;  %v949_v62 = vadd.f32 %v1577_v56, %v2187_v51  ;;  %v965_v63 = vadd.f32 %v1625_v57, %v2187_v51  ;;  %v1580_v0 = vadd.f32 %v1579_v60, %v1578_v58 }
 0x16c   : > { %v1628_v1 = vadd.f32 %v1627_v61, %v1626_v59 }
 0x16d   : > { %v950_v2 = vadd.f32 %v1580_v0, %v2187_v51  ;;  %v981_v4 = vmax.f32 %v949_v62, 0.0  ;;  %v997_v5 = vmax.f32 %v965_v63, 0.0 }
 0x16e   : > { %v966_v3 = vadd.f32 %v1628_v1, %v2187_v51 }
 0x16f   : > { %v982_v6 = vmax.f32 %v950_v2, 0.0  ;;  %v1581_v8 = vpop.f32.mrb[16].mxu0  ;;  %v1629_v9 = vpop.f32.mrb[16].mxu1 }
 0x170   : > { %v998_v7 = vmax.f32 %v966_v3, 0.0  ;;  %v1582_v10 = vpop.f32.mrb[17].mxu0  ;;  %v1630_v11 = vpop.f32.mrb[17].mxu1 }
 0x171   : > { %v1464_v12 = vpack.c.bf16 %v982_v6, %v981_v4  ;;  %v1583_v14 = vadd.f32 %v1582_v10, %v1581_v8  ;;  %v1631_v15 = vadd.f32 %v1630_v11, %v1629_v9  ;;  %v1584_v16 = vpop.f32.mrb[18].mxu0  ;;  %v1632_v17 = vpop.f32.mrb[18].mxu1 }
 0x172   : > { %v1504_v13 = vpack.c.bf16 %v998_v7, %v997_v5  ;;  %v1585_v18 = vpop.f32.mrb[19].mxu0  ;;  %v1633_v19 = vpop.f32.mrb[19].mxu1 }
 0x173   : > { %1528 = vst [vmem:[%s2194_s9 + $0x18] sm:$0xff] %v1464_v12   ;;  %v951_v20 = vadd.f32 %v1583_v14, %v2187_v51  ;;  %v967_v21 = vadd.f32 %v1631_v15, %v2187_v51  ;;  %v1586_v22 = vadd.f32 %v1585_v18, %v1584_v16  ;;  %v1634_v23 = vadd.f32 %v1633_v19, %v1632_v17 }
 0x174   : > { %1536 = vst [vmem:[%s2194_s9 + $0x58] sm:$0xff] %v1504_v13  }
 0x175   : > { %v952_v24 = vadd.f32 %v1586_v22, %v2187_v51  ;;  %v968_v25 = vadd.f32 %v1634_v23, %v2187_v51  ;;  %v983_v26 = vmax.f32 %v951_v20, 0.0  ;;  %v999_v27 = vmax.f32 %v967_v21, 0.0 }
 0x177   : > { %v984_v28 = vmax.f32 %v952_v24, 0.0  ;;  %v1000_v29 = vmax.f32 %v968_v25, 0.0  ;;  %v1587_v30 = vpop.f32.mrb[20].mxu0  ;;  %v1635_v31 = vpop.f32.mrb[20].mxu1 }
 0x178   : > { %v1588_v32 = vpop.f32.mrb[21].mxu0  ;;  %v1636_v33 = vpop.f32.mrb[21].mxu1 }
 0x179   : > { %v1469_v34 = vpack.c.bf16 %v984_v28, %v983_v26  ;;  %v1509_v35 = vpack.c.bf16 %v1000_v29, %v999_v27  ;;  %v1589_v36 = vadd.f32 %v1588_v32, %v1587_v30  ;;  %v1637_v37 = vadd.f32 %v1636_v33, %v1635_v31  ;;  %v1590_v38 = vpop.f32.mrb[22].mxu0  ;;  %v1638_v39 = vpop.f32.mrb[22].mxu1 }
 0x17a   : > { %v1591_v40 = vpop.f32.mrb[23].mxu0  ;;  %v1639_v41 = vpop.f32.mrb[23].mxu1 }
 0x17b   : > { %1529 = vst [vmem:[%s2194_s9 + $0x20] sm:$0xff] %v1469_v34   ;;  %1537 = vst [vmem:[%s2194_s9 + $0x60] sm:$0xff] %v1509_v35   ;;  %v953_v42 = vadd.f32 %v1589_v36, %v2187_v51  ;;  %v969_v43 = vadd.f32 %v1637_v37, %v2187_v51  ;;  %v1592_v44 = vadd.f32 %v1591_v40, %v1590_v38 }
 0x17c   : > { %v1640_v45 = vadd.f32 %v1639_v41, %v1638_v39 }
 0x17d   : > { %v954_v46 = vadd.f32 %v1592_v44, %v2187_v51  ;;  %v985_v48 = vmax.f32 %v953_v42, 0.0  ;;  %v1001_v49 = vmax.f32 %v969_v43, 0.0 }
 0x17e   : > { %v970_v47 = vadd.f32 %v1640_v45, %v2187_v51 }
 0x17f   : > { %v986_v50 = vmax.f32 %v954_v46, 0.0  ;;  %v1593_v53 = vpop.f32.mrb[24].mxu0  ;;  %v1641_v54 = vpop.f32.mrb[24].mxu1 }
 0x180   : > { %v1002_v52 = vmax.f32 %v970_v47, 0.0  ;;  %v1594_v55 = vpop.f32.mrb[25].mxu0  ;;  %v1642_v56 = vpop.f32.mrb[25].mxu1 }
 0x181   : > { %v1474_v57 = vpack.c.bf16 %v986_v50, %v985_v48  ;;  %v1595_v59 = vadd.f32 %v1594_v55, %v1593_v53  ;;  %v1643_v60 = vadd.f32 %v1642_v56, %v1641_v54  ;;  %v1596_v61 = vpop.f32.mrb[26].mxu0  ;;  %v1644_v62 = vpop.f32.mrb[26].mxu1 }
 0x182   : > { %v1514_v58 = vpack.c.bf16 %v1002_v52, %v1001_v49  ;;  %v1597_v63 = vpop.f32.mrb[27].mxu0  ;;  %v1645_v0 = vpop.f32.mrb[27].mxu1 }
 0x183   : > { %1530 = vst [vmem:[%s2194_s9 + $0x28] sm:$0xff] %v1474_v57   ;;  %v955_v1 = vadd.f32 %v1595_v59, %v2187_v51  ;;  %v971_v2 = vadd.f32 %v1643_v60, %v2187_v51  ;;  %v1598_v3 = vadd.f32 %v1597_v63, %v1596_v61  ;;  %v1646_v4 = vadd.f32 %v1645_v0, %v1644_v62 }
 0x184   : > { %1538 = vst [vmem:[%s2194_s9 + $0x68] sm:$0xff] %v1514_v58  }
 0x185   : > { %v956_v5 = vadd.f32 %v1598_v3, %v2187_v51  ;;  %v972_v6 = vadd.f32 %v1646_v4, %v2187_v51  ;;  %v987_v7 = vmax.f32 %v955_v1, 0.0  ;;  %v1003_v8 = vmax.f32 %v971_v2, 0.0 }
 0x187   : > { %v988_v9 = vmax.f32 %v956_v5, 0.0  ;;  %v1004_v10 = vmax.f32 %v972_v6, 0.0  ;;  %v1599_v11 = vpop.f32.mrb[28].mxu0  ;;  %v1647_v12 = vpop.f32.mrb[28].mxu1 }
 0x188   : > { %v1600_v13 = vpop.f32.mrb[29].mxu0  ;;  %v1648_v14 = vpop.f32.mrb[29].mxu1 }
 0x189   : > { %v1479_v15 = vpack.c.bf16 %v988_v9, %v987_v7  ;;  %v1519_v16 = vpack.c.bf16 %v1004_v10, %v1003_v8  ;;  %v1601_v17 = vadd.f32 %v1600_v13, %v1599_v11  ;;  %v1649_v18 = vadd.f32 %v1648_v14, %v1647_v12  ;;  %v1602_v19 = vpop.f32.mrb[30].mxu0  ;;  %v1650_v20 = vpop.f32.mrb[30].mxu1 }
 0x18a   : > { %v1603_v21 = vpop.f32.mrb[31].mxu0  ;;  %v1651_v22 = vpop.f32.mrb[31].mxu1 }
 0x18b   : > { %1531 = vst [vmem:[%s2194_s9 + $0x30] sm:$0xff] %v1479_v15   ;;  %1539 = vst [vmem:[%s2194_s9 + $0x70] sm:$0xff] %v1519_v16   ;;  %v957_v23 = vadd.f32 %v1601_v17, %v2187_v51  ;;  %v973_v24 = vadd.f32 %v1649_v18, %v2187_v51  ;;  %v1604_v25 = vadd.f32 %v1603_v21, %v1602_v19 }
 0x18c   : > { %v1652_v26 = vadd.f32 %v1651_v22, %v1650_v20 }
 0x18d   : > { %v958_v27 = vadd.f32 %v1604_v25, %v2187_v51  ;;  %v989_v29 = vmax.f32 %v957_v23, 0.0  ;;  %v1005_v30 = vmax.f32 %v973_v24, 0.0 }
 0x18e   : > { %v974_v28 = vadd.f32 %v1652_v26, %v2187_v51 }
 0x18f   : > { %v990_v31 = vmax.f32 %v958_v27, 0.0 }
 0x190   : > { %v1006_v32 = vmax.f32 %v974_v28, 0.0 }
 0x191   : > { %v1484_v33 = vpack.c.bf16 %v990_v31, %v989_v29 }
 0x192   : > { %v1524_v34 = vpack.c.bf16 %v1006_v32, %v1005_v30 }
 0x193   : > { %1532 = vst [vmem:[%s2194_s9 + $0x38] sm:$0xff] %v1484_v33  }
 0x194   : > { %1540 = vst [vmem:[%s2194_s9 + $0x78] sm:$0xff] %v1524_v34  }
 0x195   : > { %1883 = shalt.err (!%p1880_p5)
}
 0x196   : > { %s1884_s29 = scalar_lea.hbm %s2243_s7, 2048  ;;  %s1888_s20 = scalar_lea.hbm %s2298_s3, 16384 }
 0x197   : > { %p1885_p9 = scmp.ne.s32.totalorder %s2243_s7, %s1884_s29  ;;  %p1889_p3 = scmp.lt.u32.totalorder %s2243_s7, %s2298_s3 }
 0x198   : > { %p1890_p7 = scmp.lt.u32.totalorder %s1888_s20, %s1884_s29  ;;  %p1892_p4 = scmp.lt.u32.totalorder %s1884_s29, %s2243_s7 }
 0x199   : > { %p1886_p1 = pnand %p1885_p9, %p2082_p11 }
 0x19a   : > { %p1891_p13 = por %p1890_p7, %p1889_p3 }
 0x19b   : > { %p1887_p2 = pneg %p1886_p1 }
 0x19c   : > { %p1893_p6 = por %p1892_p4, %p1891_p13 }
 0x19e   : > { %p1894_p8 = pnand %p1893_p6, %p1887_p2 }
 0x1a0   : > { %1897 = shalt.err (!%p1894_p8)
}
 0x1a1   : > { %s1965_s9 = smov 64   ;;  %s1966_s10 = smov 4  }
 0x1a2   : > { %1675 = dma.vmem_to_hbm [thread:$0]  (%p2082_p11), %s2245_s11, 2048, %s2243_s7, %s1168_s15, %s1965_s9, %s1965_s9, %s1966_s10  }
 0x1a3 PF: > { %p1692_p12 = scmp.ge.s32.totalorder %s1956_s17, 2  ;;  %s1199_s18 = sand.u32 1, %s1936_s12  }
 0x1a4   : > { %p2316_p10 = scmp.ne.s32.totalorder %s2306_s23, 0  ;;  %s1200_s26 = scalar_lea.sflag [#allocation5], %s1199_s18 }
 0x1a6   : > { %p1686_p0 = pnand %p1692_p12, %p2316_p10 }
 0x1a8   : > { %1931 = dma.done.wait (!%p1686_p0), %s1200_s26, 2048  }
 0x1a9   : > { %1933 = vsyncadd (!%p1686_p0), %s1200_s26, 4294965248  ;;  %s20_s17 = sadd.s32 1, %s1956_s17   ;;  %s2317_s12 = smov %s1940_s13 }
 0x1aa   : > { %p17_p5 = scmp.ge.s32.totalorder %s20_s17, 10   ;;  %s2318_s13 = smov %s1944_s14 }
 0x1ab   : > { %s2319_s14 = smov %s2091_s5  ;;  %s2320_s15 = smov %s1952_s16 }
 0x1ac   : > { %s2321_s16 = smov %s2323_s28  ;;  %19 = sbr.rel (!%p17_p5) target bundleno = 7 (0x7), region = 93 }
 0x1b3   :  { %1205 = vsyncpa [#allocation4], 1 }
 0x1b4   :  { %1207 = vsyncpa [#allocation4 + $0x1], 1 }
 0x1b5   :  { %1208 = vsyncpa [#allocation7], 1 }
 0x1b6   :  { %1209 = vsyncpa [#allocation5], 1 }
 0x1b7   :  { %1211 = vsyncpa [#allocation5 + $0x1], 1 }

</bundles_post_ra>
